<compile_context>
chip_gen: v6e
topology: v6e:2x2x1
jax: 0.10.0
libtpu: 0.0.40
codegen_flags: <defaults>
</compile_context>

<pallas_src>
import math

import jax
import jax.numpy as jnp
from jax.experimental import pallas as pl
from jax.experimental.pallas import tpu as pltpu


_SUBLANE_ALIGN = {4: 8, 2: 16, 1: 32}


def _sub_align(itemsize: int) -> int:
    return _SUBLANE_ALIGN.get(itemsize, 8)


def _make_encoding(sents: int, token: int, dtype=jnp.float32) -> jnp.ndarray:
    """Deterministic sinusoidal positional encoding, identical to the torch init."""
    assert token % 2 == 0, "token (model) dim must be even for sin/cos interleave"
    position = jnp.arange(0, sents, dtype=jnp.float32)[:, None]          # (S, 1)
    div_term = jnp.exp(
        jnp.arange(0, token, 2, dtype=jnp.float32) * -(math.log(10000.0) / token)
    )                                                                    # (D/2,)
    enc = jnp.zeros((sents, token), dtype=jnp.float32)
    enc = enc.at[:, 0::2].set(jnp.sin(position * div_term))
    enc = enc.at[:, 1::2].set(jnp.cos(position * div_term))
    return enc.astype(dtype)


def _pe_add_kernel(x_ref, pe_ref, o_ref):
    # Pure elementwise add; the encoding tile broadcasts over the leading
    # (batch/row) block dims by normal numpy broadcasting.
    o_ref[...] = x_ref[...] + pe_ref[...]


def _choose_tiles_2d(rows: int, cols: int, itemsize: int, budget_bytes: int):
    """Tiles for the flattened (rows, cols) slab.  Returns (rb, cb, lane_pad)."""
    sub = _sub_align(itemsize)

    # Lane (last-dim) tile.  Take the full extent only if `min(rows, sub)`
    # full-width rows fit inside the budget; otherwise tile the lane axis with
    # a multiple of 128, capped so at least `sub` rows fit per tile (this is
    # the fix for the old "rb silently becomes the full batch" fallback).
    if cols * itemsize * min(rows, sub) <= budget_bytes:
        cb, pad = cols, 0                           # full extent: always legal
    else:
        cols_p = pl.cdiv(cols, 128) * 128           # pad lane axis if needed
        cb = (budget_bytes // (sub * itemsize)) // 128 * 128
        cb = max(128, min(cb, cols_p))
        pad = cols_p - cols

    # Row (sublane) tile: full extent or a multiple of `sub` (edge blocks via
    # a cdiv grid are fine for an elementwise op).
    row_budget = max(1, budget_bytes // (cb * itemsize))
    if rows <= row_budget:
        rb = rows
    else:
        rb = max(sub, (row_budget // sub) * sub)
    return rb, cb, pad


def _choose_tiles_3d(B: int, S: int, D: int, itemsize: int, budget_bytes: int):
    """Tiles (bb, sb) for the (B, S, D) path.  Caller guarantees sub*D*itemsize <= budget."""
    sub = _sub_align(itemsize)
    row_bytes = D * itemsize
    sb_cap = max(sub, (budget_bytes // row_bytes) // sub * sub)
    sb = S if S <= sb_cap else sb_cap
    bb = min(B, max(1, budget_bytes // (sb * row_bytes)))
    return bb, sb


def positional_encoding_forward(x: jnp.ndarray, encoding: jnp.ndarray,
                                *, budget_bytes: int = 2 << 20) -> jnp.ndarray:
    """x: (B, S, D), encoding: (S, D) -> (B, S, D) == x + encoding[None]."""
    B, S, D = x.shape
    assert encoding.shape == (S, D)

    itemsize = jnp.dtype(x.dtype).itemsize
    sub = _sub_align(itemsize)
    # Pass the encoding pre-cast (e.g. cached in the model dtype) to skip this.
    pe = encoding if encoding.dtype == x.dtype else encoding.astype(x.dtype)

    cost = pl.CostEstimate(
        flops=B * S * D,
        transcendentals=0,
        bytes_accessed=(2 * B * S * D + S * D) * itemsize,
    )
    params = pltpu.CompilerParams(dimension_semantics=("parallel", "parallel"))

    # ---------------- 3-D fast path: D is a multiple of 128 ----------------
    if D % 128 == 0 and sub * D * itemsize <= budget_bytes:
        bb, sb = _choose_tiles_3d(B, S, D, itemsize, budget_bytes)
        # Batch axis innermost (fastest varying): the encoding block index is
        # constant across the inner sweep, so its re-fetch is elided.
        grid = (pl.cdiv(S, sb), pl.cdiv(B, bb))
        return pl.pallas_call(
            _pe_add_kernel,
            out_shape=jax.ShapeDtypeStruct((B, S, D), x.dtype),
            grid_spec=pl.GridSpec(
                grid=grid,
                in_specs=[
                    pl.BlockSpec((bb, sb, D), lambda s, b: (b, s, 0)),
                    pl.BlockSpec((sb, D), lambda s, b: (s, 0)),
                ],
                out_specs=pl.BlockSpec((bb, sb, D), lambda s, b: (b, s, 0)),
            ),
            compiler_params=params,
            cost_estimate=cost,
        )(x, pe)

    # --------------- 2-D flattened fallback (D % 128 != 0) -----------------
    C = S * D
    x2 = x.reshape(B, C)                 # lane-dense 2-D view (free)
    pe2 = pe.reshape(1, C)               # broadcast row
    rb, cb, pad = _choose_tiles_2d(B, C, itemsize, budget_bytes)
    if pad:
        # Only hit when the lane axis must be tiled and C % 128 != 0.
        x2 = jnp.pad(x2, ((0, 0), (0, pad)))
        pe2 = jnp.pad(pe2, ((0, 0), (0, pad)))
    Cp = C + pad

    # Row/batch axis innermost so the (1, cb) encoding tile is re-fetched only
    # when the column tile changes.
    grid = (pl.cdiv(Cp, cb), pl.cdiv(B, rb))
    out2 = pl.pallas_call(
        _pe_add_kernel,
        out_shape=jax.ShapeDtypeStruct((B, Cp), x.dtype),
        grid_spec=pl.GridSpec(
            grid=grid,
            in_specs=[
                pl.BlockSpec((rb, cb), lambda j, i: (i, j)),
                pl.BlockSpec((1, cb), lambda j, i: (0, j)),
            ],
            out_specs=pl.BlockSpec((rb, cb), lambda j, i: (i, j)),
        ),
        compiler_params=params,
        cost_estimate=cost,
    )(x2, pe2)

    if pad:
        out2 = out2[:, :C]
    return out2.reshape(B, S, D)


if __name__ == "__main__":
    key = jax.random.PRNGKey(0)

    # Dimension(sents=8, token=32) per the module spec; batch of 2 sentences.
    batch, sents, token = 2, 8, 32
    x = jax.random.normal(key, (batch, sents, token), dtype=jnp.float32)
    encoding = _make_encoding(sents, token, dtype=x.dtype)

    out = jax.block_until_ready(positional_encoding_forward(x, encoding))
    ref = x + encoding[None, :, :]
    assert out.shape == (batch, sents, token)
    assert jnp.allclose(out, ref, atol=1e-6), "mismatch vs reference (2-D path)"

    # Also exercise the 3-D fast path (D a multiple of 128).
    token2 = 128
    x2 = jax.random.normal(key, (batch, sents, token2), dtype=jnp.float32)
    encoding2 = _make_encoding(sents, token2, dtype=x2.dtype)
    out2 = jax.block_until_ready(positional_encoding_forward(x2, encoding2))
    ref2 = x2 + encoding2[None, :, :]
    assert jnp.allclose(out2, ref2, atol=1e-6), "mismatch vs reference (3-D path)"

    print("KERNEL_OK")
</pallas_src>

<mosaic_0001>
module attributes {stable_mosaic.version = 11 : i64} {
  func.func @_pe_add_kernel(%arg0: i32, %arg1: i32, %arg2: memref<2x256xf32, #tpu.memory_space<vmem>>, %arg3: memref<1x256xf32, #tpu.memory_space<vmem>>, %arg4: memref<2x256xf32, #tpu.memory_space<vmem>>) attributes {dimension_semantics = [#tpu.dimension_semantics<parallel>, #tpu.dimension_semantics<parallel>], iteration_bounds = array<i64: 1, 1>, scalar_prefetch = 0 : i64, scratch_operands = 0 : i64, tpu.core_type = #tpu.core_type<tc>, window_params = [{transform_indices = @transform_0, window_bounds = array<i64: 2, 256>}, {transform_indices = @transform_1, window_bounds = array<i64: 1, 256>}, {transform_indices = @transform_2, window_bounds = array<i64: 2, 256>}]} {
    %c0 = arith.constant 0 : index
    %c0_0 = arith.constant 0 : index
    %0 = vector.load %arg2[%c0, %c0_0] : memref<2x256xf32, #tpu.memory_space<vmem>>, vector<2x256xf32>
    %c0_1 = arith.constant 0 : index
    %c0_2 = arith.constant 0 : index
    %1 = vector.load %arg3[%c0_1, %c0_2] : memref<1x256xf32, #tpu.memory_space<vmem>>, vector<1x256xf32>
    %2 = vector.broadcast %1 : vector<1x256xf32> to vector<2x256xf32>
    %3 = arith.addf %0, %2 : vector<2x256xf32>
    %c0_3 = arith.constant 0 : index
    %c0_4 = arith.constant 0 : index
    %4 = vector.load %arg4[%c0_3, %c0_4] : memref<2x256xf32, #tpu.memory_space<vmem>>, vector<2x256xf32>
    tpu.vector_store %arg4[%c0_3, %c0_4], %3 {strides = array<i32>} : memref<2x256xf32, #tpu.memory_space<vmem>>, vector<2x256xf32>,
    return
  }
  func.func @transform_0(%arg0: i32, %arg1: i32) -> (i32, i32) {
    %c0_i32 = arith.constant 0 : i32
    return %arg1, %arg0 : i32, i32
  }
  func.func @transform_1(%arg0: i32, %arg1: i32) -> (i32, i32) {
    %c0_i32 = arith.constant 0 : i32
    %c0_i32_0 = arith.constant 0 : i32
    return %c0_i32, %arg0 : i32, i32
  }
  func.func @transform_2(%arg0: i32, %arg1: i32) -> (i32, i32) {
    %c0_i32 = arith.constant 0 : i32
    return %arg1, %arg0 : i32, i32
  }
}

</mosaic_0001>

<bundles_post_ra>
// kernel: tpu_custom_call.1
= control target key start
LH: loop header
LB: loop body
LE: loop exit
PB: predicated region body
PF: predicated region fallthrough
CT: control target
= control target key end

     0   :  { %7 = vsyncpa [#allocation3], 0  ;;  %s172_s0 = inlined_call_operand.hbm [shape: f32[2,256], index: 0, kind: input, shape index: {}]   ;;  %s173_s1 = inlined_call_operand.hbm [shape: f32[1,256], index: 1, kind: input, shape index: {}]   ;;  %s174_s2 = inlined_call_operand.hbm [shape: f32[2,256], index: 2, kind: output, shape index: {}]  }
   0x1   :  { %8 = vsyncpa [#allocation6], 0 }
   0x2   :  { %9 = vsyncpa [#allocation4], 0  ;;  %s144_s9 = smov [#allocation2]   ;;  %s145_s11 = smov [#allocation5]  }
   0x3   :  { %s16_s10 = sshll.u32 %s144_s9, 4  ;;  %s26_s12 = sshll.u32 %s145_s11, 4  ;;  %s17_s10 = int_to_ptr.vmem [resolvable:$true] %s16_s10  ;;  %s27_s12 = int_to_ptr.vmem [resolvable:$true] %s26_s12 }
   0x4   :  { %s86_s13 = scalar_lea.vmem %s17_s10, 64  ;;  %p91_p1 = scmp.lt.s32.totalorder %s17_s10, %s17_s10 }
   0x5   :  { %p87_p0 = scmp.ne.s32.totalorder %s17_s10, %s86_s13  ;;  %p92_p2 = scmp.lt.s32.totalorder %s86_s13, %s86_s13 }
   0x7   :  { %p93_p3 = por %p92_p2, %p91_p1 }
   0x9   :  { %p94_p4 = pnand %p93_p3, %p87_p0 }
   0xb   :  { %97 = shalt.err (!%p94_p4)
}
   0xc   :  { %19 = dma.hbm_to_vmem [thread:$0]  %s172_s0, 64, %s17_s10, [#allocation3]  }
   0xd   :  { %s106_s16 = scalar_lea.vmem %s27_s12, 32  ;;  %p111_p6 = scmp.lt.s32.totalorder %s27_s12, %s27_s12 }
   0xe   :  { %p107_p5 = scmp.ne.s32.totalorder %s27_s12, %s106_s16  ;;  %p112_p7 = scmp.lt.s32.totalorder %s106_s16, %s106_s16 }
  0x10   :  { %p113_p8 = por %p112_p7, %p111_p6 }
  0x12   :  { %p114_p9 = pnand %p113_p8, %p107_p5 }
  0x14   :  { %117 = shalt.err (!%p114_p9)
}
  0x15   :  { %29 = dma.hbm_to_vmem [thread:$0]  %s173_s1, 32, %s27_s12, [#allocation6]  }
  0x16   :  { %138 = dma.done.wait [#allocation3], 64  }
  0x17   :  { %139 = vsyncadd [#allocation3], 4294967232 }
  0x18   :  { %140 = dma.done.wait [#allocation6], 32  }
  0x19   :  { %141 = vsyncadd [#allocation6], 4294967264  ;;  %v39_v0 = vlaneseq  ;;  %v146_v1 = vmov 1983009808   ;;  %v37_v7 = vld [vmem:[#allocation5] sm:$0x3] }
  0x1a   :  { %v49_v2 = vunpack.c.l.s4 %v146_v1  ;;  %v36_v12 = vld [vmem:[#allocation2] sm:$0xf]  ;;  %s147_s0 = smov [#allocation7]  }
  0x1b   :  { %v40_v3 = vshrl.u32 %v39_v0, 7  ;;  %s64_s19 = sshll.u32 %s147_s0, 4  ;;  %s65_s19 = int_to_ptr.vmem [resolvable:$true] %s64_s19 }
  0x1c   :  { %v50_v6 = vunpack.c.0.s8 %v49_v2  ;;  %s118_s1 = scalar_lea.vmem %s65_s19, 64  ;;  %p123_p11 = scmp.lt.s32.totalorder %s65_s19, %s65_s19 }
  0x1d   :  { %v41_v4 = vsub.s32 0, %v40_v3  ;;  %v45_v5 = vsub.s32 1, %v40_v3  ;;  %p119_p10 = scmp.ne.s32.totalorder %s65_s19, %s118_s1  ;;  %p124_p12 = scmp.lt.s32.totalorder %s118_s1, %s118_s1 }
  0x1e   :  { %v53_v10 = vsub.s32 %v50_v6, %v40_v3 }
  0x1f   :  { %v42_v8 = vrot.slane %v37_v7, %v41_v4  ;;  %v46_v9 = vrot.slane %v37_v7, %v45_v5  ;;  %p125_p13 = por %p124_p12, %p123_p11 }
  0x21   :  { %v47_v11 = vcombine.low %v42_v8, %v46_v9  ;;  %p126_p0 = pnand %p125_p13, %p119_p10 }
  0x23   :  { %v54_v13 = vrot.slane %v47_v11, %v53_v10 }
  0x25   :  { %v56_v14 = vadd.f32 %v54_v13, %v36_v12 }
  0x27   :  { %57 = vst [vmem:[#allocation7] sm:$0xf] %v56_v14 }
  0x28   :  { %129 = shalt.err (!%p126_p0)
}
  0x29   :  { %67 = dma.vmem_to_hbm [thread:$0]  %s65_s19, 64, %s174_s2, [#allocation4]  }
  0x2a   :  { %142 = dma.done.wait [#allocation4], 64  }
  0x2b   :  { %143 = vsyncadd [#allocation4], 4294967232 }
  0x2c   :  { %71 = vsyncpa [#allocation3], 1 }
  0x2d   :  { %72 = vsyncpa [#allocation6], 1 }
  0x2e   :  { %73 = vsyncpa [#allocation4], 1 }

</bundles_post_ra>
